<compile_context>
chip_gen: v7x
topology: tpu7x:2x2x1
jax: 0.10.0
libtpu: 0.0.40
codegen_flags: <defaults>
</compile_context>

<pallas_src>
import functools

import jax
import jax.numpy as jnp
from jax.experimental import pallas as pl
from jax.experimental.pallas import tpu as pltpu

_LANE = 128      # lane width (last-dim tiling for MXU operands)
_SUBLANE = 8     # f32 sublane granularity (second-to-last dim tiling)
_MAX_BLOCK_BATCH = 4096   # per-step rows; keeps f32 intermediates to a few MiB


def _round_up(n, m):
    return ((n + m - 1) // m) * m


def _tpu_kind():
    try:
        return jax.devices()[0].device_kind.lower()
    except Exception:
        return ""


_KIND = _tpu_kind()
_IS_V7 = ("v7" in _KIND) or ("7x" in _KIND)
_IS_PRE_V6 = any(tag in _KIND for tag in ("v2", "v3", "v4", "v5"))
# v5e (and older) have no bf16 VPU -> keep elementwise math in f32 there.
_EW_DTYPE = jnp.float32 if _IS_PRE_V6 else jnp.bfloat16
# Physical VMEM ceiling per generation (v7x: 64 MiB per TC, v5e/v6e: 128 MiB).
_VMEM_PHYS_MAX = (64 if _IS_V7 else 128) * 1024 * 1024


def _mlp_kernel(x_ref, w1_ref, b1_ref, w2_ref, b2_ref, w3_ref, b3_ref, o_ref):
    """Fused forward: sigmoid(relu(relu(x@W1+b1)@W2+b2)@W3+b3).

    x arrives in its original dtype and is cast to bf16 here (cheap VPU op
    hidden under the MXU) -- no wrapper-side cast pass over x.  Matmuls use
    bf16 operands with f32 accumulation; the layer-1/2 bias+ReLU run in the
    bias dtype (bf16 on v6e/v7x, f32 on v5e); layer-3 bias+sigmoid stays f32.
    """
    x = x_ref[...].astype(w1_ref.dtype)

    # layer1: Linear + ReLU
    h1 = jnp.dot(x, w1_ref[...], preferred_element_type=jnp.float32)
    h1 = jnp.maximum(h1.astype(b1_ref.dtype) + b1_ref[...], 0)

    # layer2: Linear + ReLU
    h2 = jnp.dot(h1.astype(w2_ref.dtype), w2_ref[...],
                 preferred_element_type=jnp.float32)
    h2 = jnp.maximum(h2.astype(b2_ref.dtype) + b2_ref[...], 0)

    # layer3: Linear + Sigmoid (narrow out_dim store, f32 elementwise)
    h3 = jnp.dot(h2.astype(w3_ref.dtype), w3_ref[...],
                 preferred_element_type=jnp.float32)
    o_ref[...] = jax.nn.sigmoid(h3 + b3_ref[...]).astype(o_ref.dtype)


def prepare_params(w1, b1, w2, b2, w3, b3, elementwise_dtype=None):
    """One-time parameter packing (call once, reuse across forward calls).

    Pads the hidden fan-out dims to full 128-lane tiles (zero weight columns /
    bias entries give relu(0)=0 hidden units that hit zero rows of the next
    weight, so the math is unchanged) and casts the MXU operands to bf16.
    out_dim is NOT padded -- the output is written at its real width.
    """
    if elementwise_dtype is None:
        elementwise_dtype = _EW_DTYPE
    in_dim, n_hidden_1 = w1.shape
    n_hidden_2 = w2.shape[1]
    out_dim = w3.shape[1]
    h1_p = _round_up(n_hidden_1, _LANE)
    h2_p = _round_up(n_hidden_2, _LANE)

    def pad2(a, rows, cols):
        return jnp.pad(a, ((0, rows - a.shape[0]), (0, cols - a.shape[1])))

    w1_p = pad2(w1, in_dim, h1_p).astype(jnp.bfloat16)
    w2_p = pad2(w2, h1_p, h2_p).astype(jnp.bfloat16)
    w3_p = pad2(w3, h2_p, out_dim).astype(jnp.bfloat16)
    b1_p = pad2(b1.reshape(1, -1), 1, h1_p).astype(elementwise_dtype)
    b2_p = pad2(b2.reshape(1, -1), 1, h2_p).astype(elementwise_dtype)
    b3_p = b3.reshape(1, -1).astype(jnp.float32)
    return (w1_p, b1_p, w2_p, b2_p, w3_p, b3_p)


def _pick_block_batch(batch):
    """Near-zero batch padding; grid=1 on single-TC chips, even #steps on v7x."""
    if _IS_V7 and batch > _SUBLANE:
        # 2 TensorCores: even number of grid steps so megacore sharding balances.
        n_steps = 2 * max(1, -(-batch // (2 * _MAX_BLOCK_BATCH)))
        return _round_up(-(-batch // n_steps), _SUBLANE)
    # single TensorCore: one big block unless the batch is huge.
    if batch <= _MAX_BLOCK_BATCH:
        return batch
    n_steps = -(-batch // _MAX_BLOCK_BATCH)
    return _round_up(-(-batch // n_steps), _SUBLANE)


@functools.partial(jax.jit, static_argnames=("block_batch",))
def activation_net_forward(x, params, *, block_batch=None):
    """Forward pass. `params` must come from prepare_params()."""
    w1, b1, w2, b2, w3, b3 = params
    batch, in_dim = x.shape
    h1_p = w1.shape[1]
    h2_p = w2.shape[1]
    out_dim = w3.shape[1]

    if block_batch is None:
        block_batch = _pick_block_batch(batch)
    block_batch = min(block_batch, batch)
    assert block_batch == batch or block_batch % _SUBLANE == 0, (
        "block_batch must equal batch or be a multiple of 8")
    grid = (pl.cdiv(batch, block_batch),)   # last block may be partial (masked)

    bf16_b, f32_b = 2, 4
    x_b = jnp.dtype(x.dtype).itemsize
    ew_b = jnp.dtype(b1.dtype).itemsize

    # Actual VMEM footprint (x/out double-buffered, weights resident with the
    # default second buffer, live f32+bf16 intermediates) with 2x headroom,
    # clamped only to the per-generation physical max.
    vmem_needed = (
        2 * block_batch * in_dim * x_b
        + 2 * block_batch * out_dim * x_b
        + 2 * (in_dim * h1_p + h1_p * h2_p + h2_p * out_dim) * bf16_b
        + 2 * ((h1_p + h2_p) * ew_b + out_dim * f32_b)
        + block_batch * (h1_p + h2_p) * (f32_b + bf16_b)
        + block_batch * out_dim * f32_b
    )
    vmem_limit = int(min(max(2 * vmem_needed, 32 * 1024 * 1024), _VMEM_PHYS_MAX))

    cost = pl.CostEstimate(
        flops=2 * batch * (in_dim * h1_p + h1_p * h2_p + h2_p * out_dim),
        transcendentals=batch * out_dim,
        bytes_accessed=(
            batch * in_dim * x_b
            + (in_dim * h1_p + h1_p * h2_p + h2_p * out_dim) * bf16_b
            + (h1_p + h2_p) * ew_b + out_dim * f32_b
            + batch * out_dim * x_b
        ),
    )

    # NOTE: weights/biases are tiny (~100 KB), so the default double-buffering
    # of the constant-index blocks is left in place; revisit with
    # pipeline_mode=pl.Buffered(1) only if hidden dims grow large on v7x.
    return pl.pallas_call(
        _mlp_kernel,
        out_shape=jax.ShapeDtypeStruct((batch, out_dim), x.dtype),
        grid_spec=pl.GridSpec(
            grid=grid,
            in_specs=[
                # x: streamed over the batch axis (original f32, cast in-kernel)
                pl.BlockSpec((block_batch, in_dim), lambda i: (i, 0)),
                # weights / biases: full arrays, resident across the grid
                pl.BlockSpec((in_dim, h1_p), lambda i: (0, 0)),
                pl.BlockSpec((1, h1_p), lambda i: (0, 0)),
                pl.BlockSpec((h1_p, h2_p), lambda i: (0, 0)),
                pl.BlockSpec((1, h2_p), lambda i: (0, 0)),
                pl.BlockSpec((h2_p, out_dim), lambda i: (0, 0)),
                pl.BlockSpec((1, out_dim), lambda i: (0, 0)),
            ],
            out_specs=pl.BlockSpec((block_batch, out_dim), lambda i: (i, 0)),
        ),
        compiler_params=pltpu.CompilerParams(
            dimension_semantics=("parallel",),
            vmem_limit_bytes=vmem_limit,
        ),
        cost_estimate=cost,
    )(x, w1, b1, w2, b2, w3, b3)


def init_params(key, in_dim, n_hidden_1, n_hidden_2, out_dim):
    """nn.Linear default init: U(-1/sqrt(fan_in), +1/sqrt(fan_in))."""
    keys = jax.random.split(key, 6)

    def linear(kw, kb, fan_in, fan_out):
        bound = 1.0 / jnp.sqrt(fan_in)
        # stored as [fan_in, fan_out] (transposed vs PyTorch's [out, in])
        w = jax.random.uniform(kw, (fan_in, fan_out), jnp.float32, -bound, bound)
        b = jax.random.uniform(kb, (fan_out,), jnp.float32, -bound, bound)
        return w, b

    w1, b1 = linear(keys[0], keys[1], in_dim, n_hidden_1)
    w2, b2 = linear(keys[2], keys[3], n_hidden_1, n_hidden_2)
    w3, b3 = linear(keys[4], keys[5], n_hidden_2, out_dim)
    return w1, b1, w2, b2, w3, b3


def reference_forward(x, w1, b1, w2, b2, w3, b3):
    h1 = jnp.maximum(x @ w1 + b1, 0.0)
    h2 = jnp.maximum(h1 @ w2 + b2, 0.0)
    return jax.nn.sigmoid(h2 @ w3 + b3)


if __name__ == "__main__":
    key = jax.random.PRNGKey(0)
    k_x, k_p, k_x2 = jax.random.split(key, 3)

    in_dim, n_hidden_1, n_hidden_2, out_dim = 32, 64, 32, 16
    raw_params = init_params(k_p, in_dim, n_hidden_1, n_hidden_2, out_dim)
    # One-time packing; per-call path is a single fused pallas_call afterwards.
    params = prepare_params(*raw_params)
    params = tuple(jax.block_until_ready(p) for p in params)

    # small single-block case (grid=1, batch not a multiple of 8)
    x_small = jax.random.normal(k_x, (2, in_dim), jnp.float32)
    out_small = jax.block_until_ready(activation_net_forward(x_small, params))
    ref_small = reference_forward(x_small, *raw_params)
    assert out_small.shape == (2, out_dim)
    # bf16 MXU operands (f32 accumulation) -> loosened tolerance vs f32 ref
    assert jnp.allclose(out_small, ref_small, atol=2e-2, rtol=2e-2), (
        float(jnp.max(jnp.abs(out_small - ref_small))))

    # larger case, default tiling (grid=1 on v5e/v6e, even split on v7x)
    x_big = jax.random.normal(k_x2, (640, in_dim), jnp.float32)
    out_big = jax.block_until_ready(activation_net_forward(x_big, params))
    ref_big = reference_forward(x_big, *raw_params)
    assert out_big.shape == (640, out_dim)
    assert jnp.allclose(out_big, ref_big, atol=2e-2, rtol=2e-2), (
        float(jnp.max(jnp.abs(out_big - ref_big))))

    # forced multi-step grid with a partial last block (640 = 256+256+128):
    # exercises the pipelined path + masked output writeback, no batch padding.
    out_tiled = jax.block_until_ready(
        activation_net_forward(x_big, params, block_batch=256))
    assert jnp.allclose(out_tiled, ref_big, atol=2e-2, rtol=2e-2), (
        float(jnp.max(jnp.abs(out_tiled - ref_big))))

    print("KERNEL_OK")
</pallas_src>

<mosaic_0001>
module attributes {stable_mosaic.version = 11 : i64} {
  func.func @_mlp_kernel(%arg0: i32, %arg1: memref<2x32xf32, #tpu.memory_space<vmem>>, %arg2: memref<32x128xbf16, #tpu.memory_space<vmem>>, %arg3: memref<1x128xbf16, #tpu.memory_space<vmem>>, %arg4: memref<128x128xbf16, #tpu.memory_space<vmem>>, %arg5: memref<1x128xbf16, #tpu.memory_space<vmem>>, %arg6: memref<128x16xbf16, #tpu.memory_space<vmem>>, %arg7: memref<1x16xf32, #tpu.memory_space<vmem>>, %arg8: memref<2x16xf32, #tpu.memory_space<vmem>>) attributes {dimension_semantics = [#tpu.dimension_semantics<parallel>], iteration_bounds = array<i64: 1>, scalar_prefetch = 0 : i64, scratch_operands = 0 : i64, tpu.core_type = #tpu.core_type<tc>, window_params = [{transform_indices = @transform_0, window_bounds = array<i64: 2, 32>}, {pipeline_mode = #tpu.pipeline_mode<synchronous>, transform_indices = @transform_1, window_bounds = array<i64: 32, 128>}, {pipeline_mode = #tpu.pipeline_mode<synchronous>, transform_indices = @transform_2, window_bounds = array<i64: 1, 128>}, {pipeline_mode = #tpu.pipeline_mode<synchronous>, transform_indices = @transform_3, window_bounds = array<i64: 128, 128>}, {pipeline_mode = #tpu.pipeline_mode<synchronous>, transform_indices = @transform_4, window_bounds = array<i64: 1, 128>}, {pipeline_mode = #tpu.pipeline_mode<synchronous>, transform_indices = @transform_5, window_bounds = array<i64: 128, 16>}, {pipeline_mode = #tpu.pipeline_mode<synchronous>, transform_indices = @transform_6, window_bounds = array<i64: 1, 16>}, {transform_indices = @transform_7, window_bounds = array<i64: 2, 16>}]} {
    %c0 = arith.constant 0 : index
    %c0_0 = arith.constant 0 : index
    %0 = vector.load %arg1[%c0, %c0_0] : memref<2x32xf32, #tpu.memory_space<vmem>>, vector<2x32xf32>
    %1 = arith.truncf %0 : vector<2x32xf32> to vector<2x32xbf16>
    %c0_1 = arith.constant 0 : index
    %c0_2 = arith.constant 0 : index
    %2 = vector.load %arg2[%c0_1, %c0_2] : memref<32x128xbf16, #tpu.memory_space<vmem>>, vector<32x128xbf16>
    %cst = arith.constant dense<0.000000e+00> : vector<2x128xf32>
    %3 = tpu.matmul %1, %2, %cst {dimension_numbers = #tpu.dot_dimension_numbers<[1], [0], [0], [1], [0, 0, 1, 1], [], []>} : vector<2x32xbf16>, vector<32x128xbf16>, vector<2x128xf32> -> vector<2x128xf32>
    %4 = arith.truncf %3 : vector<2x128xf32> to vector<2x128xbf16>
    %c0_3 = arith.constant 0 : index
    %c0_4 = arith.constant 0 : index
    %5 = vector.load %arg3[%c0_3, %c0_4] : memref<1x128xbf16, #tpu.memory_space<vmem>>, vector<1x128xbf16>
    %6 = vector.broadcast %5 : vector<1x128xbf16> to vector<2x128xbf16>
    %7 = arith.addf %4, %6 : vector<2x128xbf16>
    %cst_5 = arith.constant 0.000000e+00 : bf16
    %8 = vector.broadcast %cst_5 : bf16 to vector<2x128xbf16>
    %9 = arith.maximumf %7, %8 : vector<2x128xbf16>
    %c0_6 = arith.constant 0 : index
    %c0_7 = arith.constant 0 : index
    %10 = vector.load %arg4[%c0_6, %c0_7] : memref<128x128xbf16, #tpu.memory_space<vmem>>, vector<128x128xbf16>
    %cst_8 = arith.constant dense<0.000000e+00> : vector<2x128xf32>
    %11 = tpu.matmul %9, %10, %cst_8 {dimension_numbers = #tpu.dot_dimension_numbers<[1], [0], [0], [1], [0, 0, 1, 1], [], []>} : vector<2x128xbf16>, vector<128x128xbf16>, vector<2x128xf32> -> vector<2x128xf32>
    %12 = arith.truncf %11 : vector<2x128xf32> to vector<2x128xbf16>
    %c0_9 = arith.constant 0 : index
    %c0_10 = arith.constant 0 : index
    %13 = vector.load %arg5[%c0_9, %c0_10] : memref<1x128xbf16, #tpu.memory_space<vmem>>, vector<1x128xbf16>
    %14 = vector.broadcast %13 : vector<1x128xbf16> to vector<2x128xbf16>
    %15 = arith.addf %12, %14 : vector<2x128xbf16>
    %cst_11 = arith.constant 0.000000e+00 : bf16
    %16 = vector.broadcast %cst_11 : bf16 to vector<2x128xbf16>
    %17 = arith.maximumf %15, %16 : vector<2x128xbf16>
    %c0_12 = arith.constant 0 : index
    %c0_13 = arith.constant 0 : index
    %18 = vector.load %arg6[%c0_12, %c0_13] : memref<128x16xbf16, #tpu.memory_space<vmem>>, vector<128x16xbf16>
    %cst_14 = arith.constant dense<0.000000e+00> : vector<2x16xf32>
    %19 = tpu.matmul %17, %18, %cst_14 {dimension_numbers = #tpu.dot_dimension_numbers<[1], [0], [0], [1], [0, 0, 1, 1], [], []>} : vector<2x128xbf16>, vector<128x16xbf16>, vector<2x16xf32> -> vector<2x16xf32>
    %c0_15 = arith.constant 0 : index
    %c0_16 = arith.constant 0 : index
    %20 = vector.load %arg7[%c0_15, %c0_16] : memref<1x16xf32, #tpu.memory_space<vmem>>, vector<1x16xf32>
    %21 = vector.broadcast %20 : vector<1x16xf32> to vector<2x16xf32>
    %22 = arith.addf %19, %21 : vector<2x16xf32>
    %23 = arith.negf %22 : vector<2x16xf32>
    %24 = math.exp %23 : vector<2x16xf32>
    %cst_17 = arith.constant 1.000000e+00 : f32
    %25 = vector.broadcast %cst_17 : f32 to vector<2x16xf32>
    %26 = arith.addf %25, %24 : vector<2x16xf32>
    %27 = arith.divf %25, %26 : vector<2x16xf32>
    %c0_18 = arith.constant 0 : index
    %c0_19 = arith.constant 0 : index
    %28 = vector.load %arg8[%c0_18, %c0_19] : memref<2x16xf32, #tpu.memory_space<vmem>>, vector<2x16xf32>
    tpu.vector_store %arg8[%c0_18, %c0_19], %27 {strides = array<i32>} : memref<2x16xf32, #tpu.memory_space<vmem>>, vector<2x16xf32>,
    return
  }
  func.func @transform_0(%arg0: i32) -> (i32, i32) {
    %c0_i32 = arith.constant 0 : i32
    %c0_i32_0 = arith.constant 0 : i32
    return %arg0, %c0_i32 : i32, i32
  }
  func.func @transform_1(%arg0: i32) -> (i32, i32) {
    %c0_i32 = arith.constant 0 : i32
    %c0_i32_0 = arith.constant 0 : i32
    %c0_i32_1 = arith.constant 0 : i32
    return %c0_i32, %c0_i32_0 : i32, i32
  }
  func.func @transform_2(%arg0: i32) -> (i32, i32) {
    %c0_i32 = arith.constant 0 : i32
    %c0_i32_0 = arith.constant 0 : i32
    %c0_i32_1 = arith.constant 0 : i32
    return %c0_i32, %c0_i32_0 : i32, i32
  }
  func.func @transform_3(%arg0: i32) -> (i32, i32) {
    %c0_i32 = arith.constant 0 : i32
    %c0_i32_0 = arith.constant 0 : i32
    %c0_i32_1 = arith.constant 0 : i32
    return %c0_i32, %c0_i32_0 : i32, i32
  }
  func.func @transform_4(%arg0: i32) -> (i32, i32) {
    %c0_i32 = arith.constant 0 : i32
    %c0_i32_0 = arith.constant 0 : i32
    %c0_i32_1 = arith.constant 0 : i32
    return %c0_i32, %c0_i32_0 : i32, i32
  }
  func.func @transform_5(%arg0: i32) -> (i32, i32) {
    %c0_i32 = arith.constant 0 : i32
    %c0_i32_0 = arith.constant 0 : i32
    %c0_i32_1 = arith.constant 0 : i32
    return %c0_i32, %c0_i32_0 : i32, i32
  }
  func.func @transform_6(%arg0: i32) -> (i32, i32) {
    %c0_i32 = arith.constant 0 : i32
    %c0_i32_0 = arith.constant 0 : i32
    %c0_i32_1 = arith.constant 0 : i32
    return %c0_i32, %c0_i32_0 : i32, i32
  }
  func.func @transform_7(%arg0: i32) -> (i32, i32) {
    %c0_i32 = arith.constant 0 : i32
    %c0_i32_0 = arith.constant 0 : i32
    return %arg0, %c0_i32 : i32, i32
  }
}

</mosaic_0001>

<bundles_post_ra>
// kernel: activation_net_forward.1
= control target key start
LH: loop header
LB: loop body
LE: loop exit
PB: predicated region body
PF: predicated region fallthrough
CT: control target
= control target key end

     0   :  { %12 = vsyncpa [#allocation3], 0  ;;  %s731_s0 = inlined_call_operand.vmem [shape: f32[2,32], index: 0, kind: input, shape index: {}]   ;;  %s732_s1 = inlined_call_operand.vmem [shape: bf16[32,128], index: 1, kind: input, shape index: {}]   ;;  %s733_s2 = inlined_call_operand.hbm [shape: bf16[1,128], index: 2, kind: input, shape index: {}]   ;;  %s734_s3 = inlined_call_operand.vmem [shape: bf16[128,128], index: 3, kind: input, shape index: {}]   ;;  %s735_s4 = inlined_call_operand.hbm [shape: bf16[1,128], index: 4, kind: input, shape index: {}]   ;;  %s736_s5 = inlined_call_operand.vmem [shape: bf16[128,16], index: 5, kind: input, shape index: {}]   ;;  %s737_s6 = inlined_call_operand.vmem [shape: f32[1,16], index: 6, kind: input, shape index: {}]   ;;  %s738_s7 = inlined_call_operand.hbm [shape: f32[2,16], index: 7, kind: output, shape index: {}]  }
   0x1   :  { %13 = vsyncpa [#allocation6], 0 }
   0x2   :  { %14 = vsyncpa [#allocation4], 0  ;;  %s565_s24 = smov [#allocation2]   ;;  %s566_s26 = smov [#allocation5]  }
   0x3   :  { %s25_s25 = sshll.u32 %s565_s24, 4  ;;  %s37_s27 = sshll.u32 %s566_s26, 4  ;;  %s26_s25 = int_to_ptr.vmem [resolvable:$true] %s25_s25  ;;  %s38_s27 = int_to_ptr.vmem [resolvable:$true] %s37_s27 }
   0x4   :  { %s493_s30 = scalar_lea.hbm %s733_s2, 16 }
   0x5   :  { %p494_p0 = scmp.ne.s32.totalorder %s733_s2, %s493_s30  ;;  %p497_p1 = scmp.lt.u32.totalorder %s493_s30, %s733_s2 }
   0x7   :  { %p499_p2 = pnand %p497_p1, %p494_p0 }
   0x9   :  { %502 = shalt.err (!%p499_p2)
}
   0xa   :  { %s503_s12 = scalar_lea.vmem %s26_s25, 16  ;;  %s507_s13 = scalar_lea.vmem %s26_s25, 32 }
   0xb   :  { %p504_p3 = scmp.ne.s32.totalorder %s26_s25, %s503_s12  ;;  %p508_p4 = scmp.lt.s32.totalorder %s26_s25, %s26_s25 }
   0xc   :  { %p509_p5 = scmp.lt.s32.totalorder %s507_s13, %s503_s12 }
   0xe   :  { %p510_p6 = por %p509_p5, %p508_p4 }
  0x10   :  { %p511_p7 = pnand %p510_p6, %p504_p3 }
  0x12   :  { %514 = shalt.err (!%p511_p7)
}
  0x13   :  { %28 = dma.hbm_to_vmem [thread:$0]  %s733_s2, 16, %s26_s25, [#allocation3]  }
  0x14   :  { %s515_s18 = scalar_lea.hbm %s735_s4, 16 }
  0x15   :  { %p516_p8 = scmp.ne.s32.totalorder %s735_s4, %s515_s18  ;;  %p519_p9 = scmp.lt.u32.totalorder %s515_s18, %s735_s4 }
  0x17   :  { %p521_p10 = pnand %p519_p9, %p516_p8 }
  0x19   :  { %524 = shalt.err (!%p521_p10)
}
  0x1a   :  { %s525_s23 = scalar_lea.vmem %s38_s27, 16  ;;  %s529_s24 = scalar_lea.vmem %s38_s27, 32 }
  0x1b   :  { %p526_p11 = scmp.ne.s32.totalorder %s38_s27, %s525_s23  ;;  %p530_p12 = scmp.lt.s32.totalorder %s38_s27, %s38_s27 }
  0x1c   :  { %p531_p13 = scmp.lt.s32.totalorder %s529_s24, %s525_s23 }
  0x1e   :  { %p532_p0 = por %p531_p13, %p530_p12 }
  0x20   :  { %p533_p1 = pnand %p532_p0, %p526_p11 }
  0x22   :  { %536 = shalt.err (!%p533_p1)
}
  0x23   :  { %40 = dma.hbm_to_vmem [thread:$0]  %s735_s4, 16, %s38_s27, [#allocation6]  }
  0x24   :  { %559 = dma.done.wait [#allocation3], 16  }
  0x25   :  { %560 = vsyncadd [#allocation3], 4294967280 }
  0x26   :  { %561 = dma.done.wait [#allocation6], 16  }
  0x27   :  { %562 = vsyncadd [#allocation6], 4294967280  ;;  %v567_v0 = vmov 0.0   ;;  %vm568_vm0 = vmmov 0   ;;  %v471_v1 = vld [vmem:[%s732_s1] sm:$0xff]   ;;  %v472_v2 = vld [vmem:[%s732_s1 + $0x8] sm:$0xff]   ;;  %v119_v19 = vlaneseq }
  0x28   :  { %417 = vmatprep.subr.bf16.mxu0 %v567_v0  ;;  %421 = vmatprep.mubr.msk.bf16.mxu0 %vm568_vm0, %v567_v0  ;;  %v52_v3 = vld [vmem:[%s731_s0] sm:$0x3]  ;;  %v474_v6 = vld [vmem:[%s734_s3 + $0x8] sm:$0xff]   ;;  %vm70_vm1 = vcmask 261120   ;;  %v475_v7 = vld [vmem:[%s734_s3 + $0x10] sm:$0xff]   ;;  %v569_v31 = vmov 0  }
  0x29   :  { %425 = vmatprep.subr.bf16.mxu1 %v567_v0  ;;  %441 = vmatprep.mubr.msk.bf16.mxu1 %vm568_vm0, %v567_v0  ;;  %v473_v4 = vld [vmem:[%s734_s3] sm:$0xff]   ;;  %v53_v5 = vpack.c.bf16 %v52_v3, %v52_v3  ;;  %v476_v8 = vld [vmem:[%s734_s3 + $0x18] sm:$0xff]   ;;  %v478_v10 = vld [vmem:[%s734_s3 + $0x28] sm:$0xff]   ;;  %v120_v20 = vshrl.u32 %v119_v19, 7  ;;  %vm357_vm2 = vcmask 123904  }
  0x2a   :  { %418 = vmatpush3.bf16.msra.mxu0 %v471_v1  ;;  %426 = vmatpush3.bf16.msra.mxu1 %v473_v4  ;;  %v477_v9 = vld [vmem:[%s734_s3 + $0x20] sm:$0xff]   ;;  %v479_v11 = vld [vmem:[%s734_s3 + $0x30] sm:$0xff]   ;;  %v480_v12 = vld [vmem:[%s734_s3 + $0x38] sm:$0xff]  }
  0x2b   :  { %419 = vmatprep.subr.bf16.mxu0 %v567_v0  ;;  %427 = vmatprep.subr.bf16.mxu1 %v567_v0  ;;  %v481_v13 = vld [vmem:[%s736_s5] sm:$0xff]   ;;  %v482_v14 = vld [vmem:[%s736_s5 + $0x8] sm:$0xff]   ;;  %v483_v15 = vld [vmem:[%s736_s5 + $0x10] sm:$0xff]   ;;  %v121_v23 = vsub.s32 0, %v120_v20 }
  0x2c   :  { %v484_v16 = vld [vmem:[%s736_s5 + $0x18] sm:$0xff]   ;;  %v485_v17 = vld [vmem:[%s736_s5 + $0x20] sm:$0xff]   ;;  %v486_v18 = vld [vmem:[%s736_s5 + $0x28] sm:$0xff]  }
  0x2d   :  { %v115_v21 = vld [vmem:[#allocation2] sm:$0x1]  ;;  %v487_v33 = vld [vmem:[%s736_s5 + $0x30] sm:$0xff]   ;;  %v488_v34 = vld [vmem:[%s736_s5 + $0x38] sm:$0xff]   ;;  %s570_s5 = smov [#allocation7]  }
  0x2e   :  { %420 = vmatpush3.bf16.msra.mxu0 %v472_v2  ;;  %428 = vmatpush3.bf16.msra.mxu1 %v474_v6  ;;  %v117_v22 = vpack.i.b16 %v115_v21, %v115_v21  ;;  %v230_v35 = vld [vmem:[#allocation5] sm:$0x1]  ;;  %v386_v45 = vld [vmem:[%s737_s6] ss:$0 sm:$0xff]  ;;  %s365_s12 = sshll.u32 %s570_s5, 4  ;;  %s366_s12 = int_to_ptr.vmem [resolvable:$true] %s365_s12 }
  0x2f   :  { %445 = vmatprep.subr.bf16.mxu0 %v567_v0  ;;  %429 = vmatprep.subr.bf16.mxu1 %v567_v0  ;;  %v232_v36 = vpack.i.b16 %v230_v35, %v230_v35  ;;  %s537_s13 = scalar_lea.vmem %s366_s12, 32  ;;  %p542_p3 = scmp.lt.s32.totalorder %s366_s12, %s366_s12 }
  0x30   :  { %v122_v24 = vrot.slane %v117_v22, %v121_v23  ;;  %p538_p2 = scmp.ne.s32.totalorder %s366_s12, %s537_s13  ;;  %p543_p4 = scmp.lt.s32.totalorder %s537_s13, %s537_s13 }
  0x31   :  { %422 = vmatmul.mubr.msk.bf16.vlgmr.msra.gmra.mrb[0].mxu0 %vm70_vm1, %v53_v5  ;;  %v237_v37 = vrot.slane %v232_v36, %v121_v23 }
  0x32   :  { %461 = vmatprep.mubr.msk.bf16.mxu0 %vm568_vm0, %v567_v0  ;;  %430 = vmatpush3.bf16.msra.mxu1 %v475_v7  ;;  %p544_p5 = por %p543_p4, %p542_p3 }
  0x33   :  { %431 = vmatprep.subr.bf16.mxu1 %v567_v0  ;;  %446 = vmatpush3.bf16.msra.mxu0 %v481_v13 }
  0x34   :  { %447 = vmatprep.subr.bf16.mxu0 %v567_v0  ;;  %p545_p6 = pnand %p544_p5, %p538_p2 }
  0x36   :  { %432 = vmatpush3.bf16.msra.mxu1 %v476_v8 }
  0x37   :  { %433 = vmatprep.subr.bf16.mxu1 %v567_v0  ;;  %448 = vmatpush3.bf16.msra.mxu0 %v482_v14 }
  0x38   :  { %449 = vmatprep.subr.bf16.mxu0 %v567_v0 }
  0x3a   :  { %434 = vmatpush3.bf16.msra.mxu1 %v477_v9 }
  0x3b   :  { %435 = vmatprep.subr.bf16.mxu1 %v567_v0  ;;  %450 = vmatpush3.bf16.msra.mxu0 %v483_v15 }
  0x3c   :  { %451 = vmatprep.subr.bf16.mxu0 %v567_v0 }
  0x3e   :  { %436 = vmatpush3.bf16.msra.mxu1 %v478_v10 }
  0x3f   :  { %437 = vmatprep.subr.bf16.mxu1 %v567_v0  ;;  %452 = vmatpush3.bf16.msra.mxu0 %v484_v16 }
  0x40   :  { %453 = vmatprep.subr.bf16.mxu0 %v567_v0 }
  0x42   :  { %438 = vmatpush3.bf16.msra.mxu1 %v479_v11 }
  0x43   :  { %439 = vmatprep.subr.bf16.mxu1 %v567_v0  ;;  %454 = vmatpush3.bf16.msra.mxu0 %v485_v17 }
  0x44   :  { %455 = vmatprep.subr.bf16.mxu0 %v567_v0 }
  0x46   :  { %440 = vmatpush3.bf16.msra.mxu1 %v480_v12 }
  0x47   :  { %456 = vmatpush3.bf16.msra.mxu0 %v486_v18 }
  0x48   :  { %457 = vmatprep.subr.bf16.mxu0 %v567_v0 }
  0x4b   :  { %458 = vmatpush3.bf16.msra.mxu0 %v487_v33 }
  0x4c   :  { %459 = vmatprep.subr.bf16.mxu0 %v567_v0 }
  0x4f   :  { %460 = vmatpush3.bf16.msra.mxu0 %v488_v34 }
 0x104   :  { %v108_v25 = vpop.f32.mrb[0].mxu0 }
 0x105   :  { %v114_v26 = vpack.c.bf16 %v108_v25, %v108_v25  ;;  %v423_v27 = vpop.f32.mrb[1].mxu0 }
 0x106   :  { %v111_v28 = vpop.f32.mrb[2].mxu0 }
 0x107   :  { %v123_v29 = vadd.bf16 %v122_v24, %v114_v26  ;;  %v424_v30 = vpop.f32.mrb[3].mxu0 }
 0x109   :  { %v124_v32 = vmax.bf16 %v569_v31, %v123_v29 }
 0x10b   :  { %442 = vmatmul.mubr.bf16.vlgmr.msra.gmra.mrb[0].mxu1 %v124_v32 }
 0x1de   :  { %v223_v38 = vpop.f32.mrb[0].mxu1 }
 0x1df   :  { %v229_v39 = vpack.c.bf16 %v223_v38, %v223_v38  ;;  %v443_v40 = vpop.f32.mrb[1].mxu1 }
 0x1e0   :  { %v226_v41 = vpop.f32.mrb[2].mxu1 }
 0x1e1   :  { %v238_v42 = vadd.bf16 %v237_v37, %v229_v39  ;;  %v444_v43 = vpop.f32.mrb[3].mxu1 }
 0x1e3   :  { %v239_v44 = vmax.bf16 %v569_v31, %v238_v42 }
 0x1e5   :  { %462 = vmatmul.mubr.bf16.vlgmr.msra.gmra.mrb[4].mxu0 %v239_v44 }
 0x2b8   :  { %v345_v46 = vpop.f32.mrb[4].mxu0 }
 0x2b9   :  { %v346_v47 = vadd.f32 %v386_v45, %v345_v46  ;;  %v463_v48 = vpop.f32.mrb[5].mxu0 }
 0x2ba   :  { %v348_v49 = vpop.f32.mrb[6].mxu0 }
 0x2bb   :  { %v395_v50 = vmul.f32 -1.442695, %v346_v47  ;;  %v464_v51 = vpop.f32.mrb[7].mxu0 }
 0x2bd   :  { %489 = vpow2.f32 %v395_v50 }
 0x2c7   :  { %v490_v52 = vpop.eup %489 }
 0x2c8   :  { %v354_v53 = vadd.f32 1.0, %v490_v52 }
 0x2ca   :  { %491 = vrcp.f32 %v354_v53 }
 0x2d4   :  { %v492_v54 = vpop.eup %491 }
 0x2d5   :  { %358 = vst.msk [vmem:[#allocation7] sm:$0x3] %vm357_vm2, %v492_v54 }
 0x2d6   :  { %548 = shalt.err (!%p545_p6)
}
 0x2d7   :  { %s549_s15 = scalar_lea.hbm %s738_s7, 32 }
 0x2d8   :  { %p550_p7 = scmp.ne.s32.totalorder %s738_s7, %s549_s15  ;;  %p553_p8 = scmp.lt.u32.totalorder %s549_s15, %s738_s7 }
 0x2da   :  { %p555_p9 = pnand %p553_p8, %p550_p7 }
 0x2dc   :  { %558 = shalt.err (!%p555_p9)
}
 0x2dd   :  { %368 = dma.vmem_to_hbm [thread:$0]  %s366_s12, 32, %s738_s7, [#allocation4]  }
 0x2de   :  { %563 = dma.done.wait [#allocation4], 32  }
 0x2df   :  { %564 = vsyncadd [#allocation4], 4294967264 }
 0x2e0   :  { %372 = vsyncpa [#allocation3], 1 }
 0x2e1   :  { %373 = vsyncpa [#allocation6], 1 }
 0x2e2   :  { %374 = vsyncpa [#allocation4], 1 }

</bundles_post_ra>
